<compile_context>
chip_gen: v6e
topology: v6e:2x2x1
jax: 0.10.0
libtpu: 0.0.40
codegen_flags: <defaults>
</compile_context>

<pallas_src>
import jax
import jax.numpy as jnp
from jax.experimental import pallas as pl
from jax.experimental.pallas import tpu as pltpu

EPS = 1e-5  # nn.InstanceNorm2d default eps


def resnet_block_kernel(xr_ref, bk1_ref, b1_ref, bk2_ref, b2_ref,
                        sel_ref, selt_ref, o_ref, hp_ref):
    # xr_ref : (H+2, W*C)  row-reflect-padded input, W and C flattened into lanes
    # bk*_ref: (3, W*C, W*C) banded conv weights (column taps + reflection folded in)
    # b*_ref : (1, W*C)     conv bias, channel-tiled to the lane layout
    # sel_ref: (W*C, C)     lane -> channel summing selector
    # selt_ref: (C, W*C)    channel -> lane broadcasting selector
    # o_ref  : (H, W*C)     output slab
    # hp_ref : (H+2, W*C)   VMEM scratch for the row-padded intermediate
    Hp, WC = xr_ref.shape
    H = Hp - 2
    C = sel_ref.shape[1]
    W = WC // C
    inv_hw = 1.0 / float(H * W)

    sel = sel_ref[...]
    selt = selt_ref[...]

    def conv3x3(src, bk_ref, b_ref):
        # 3 fat MXU matmuls over row windows; fp32 accumulation.
        acc = jnp.zeros((H, WC), jnp.float32)
        for ki in range(3):
            acc = acc + jnp.dot(src(ki), bk_ref[ki],
                                preferred_element_type=jnp.float32)
        return acc + b_ref[...]

    def inst_norm(a):
        # Fused single-pass stats: sum and sum-of-squares, then E[x^2]-E[x]^2.
        rs = jnp.sum(a, axis=0, keepdims=True)          # (1, WC)
        rss = jnp.sum(a * a, axis=0, keepdims=True)     # (1, WC)
        mean = jnp.dot(rs, sel, preferred_element_type=jnp.float32) * inv_hw   # (1, C)
        msq = jnp.dot(rss, sel, preferred_element_type=jnp.float32) * inv_hw   # (1, C)
        var = jnp.maximum(msq - mean * mean, 0.0)
        inv = jax.lax.rsqrt(var + EPS)                                          # EUP
        mean_b = jnp.dot(mean, selt, preferred_element_type=jnp.float32)        # (1, WC)
        inv_b = jnp.dot(inv, selt, preferred_element_type=jnp.float32)          # (1, WC)
        return (a - mean_b) * inv_b

    # ---- conv1 + InstanceNorm + ReLU ----
    a1 = conv3x3(lambda ki: xr_ref[pl.ds(ki, H), :], bk1_ref, b1_ref)
    h = jnp.maximum(inst_norm(a1), 0.0)

    # ---- row-reflection pad of the intermediate into VMEM scratch ----
    # (column reflection is folded into bk2, so all writes are full lane rows)
    hp_ref[pl.ds(1, H), :] = h
    hp_ref[pl.ds(0, 1), :] = h[1:2, :]
    hp_ref[pl.ds(H + 1, 1), :] = h[H - 2:H - 1, :]

    # ---- conv2 + InstanceNorm ----
    a2 = conv3x3(lambda ki: hp_ref[pl.ds(ki, H), :], bk2_ref, b2_ref)
    y = inst_norm(a2)

    # ---- residual add: residual read from the interior rows of the padded input ----
    o_ref[...] = xr_ref[pl.ds(1, H), :] + y


def _reflect_index(t, n):
    if t < 0:
        return -t
    if t >= n:
        return 2 * n - 2 - t
    return t


def _band_weights(w_hwio, W):
    """Fold the 3 column taps of a 3x3 conv (with width-1 reflection padding)
    into banded (W*C_in, W*C_out) matrices, one per row tap ki."""
    C_in, C_out = w_hwio.shape[2], w_hwio.shape[3]
    mats = []
    for ki in range(3):
        m = jnp.zeros((W * C_in, W * C_out), jnp.float32)
        for kj in range(3):
            src = jnp.array([_reflect_index(x + kj - 1, W) for x in range(W)],
                            dtype=jnp.int32)
            # R[px, x] = 1 iff input pixel px feeds output pixel x for this tap.
            R = jax.nn.one_hot(src, W, dtype=jnp.float32).T
            m = m + jnp.kron(R, w_hwio[ki, kj].astype(jnp.float32))
        mats.append(m)
    return jnp.stack(mats, axis=0)          # (3, W*C_in, W*C_out)


def resnet_block(x_nchw, w1, b1, w2, b2):
    """ResnetBlock forward. x_nchw: (N, C, H, W) float32 (PyTorch layout).
    w*: (3, 3, C, C) HWIO, b*: (C,)."""
    N, C, H, W = x_nchw.shape
    assert H >= 2 and W >= 2, "reflection padding requires H >= 2 and W >= 2"
    Hp = H + 2
    WC = W * C

    x = jnp.transpose(x_nchw, (0, 2, 3, 1)).astype(jnp.float32)        # NHWC
    # Row-only reflection pad (column reflection folded into band weights),
    # then flatten (W, C) into a lane-dense last dimension.
    xr = jnp.pad(x, ((0, 0), (1, 1), (0, 0), (0, 0)), mode="reflect")
    xr = xr.reshape(N, Hp, WC)

    bk1 = _band_weights(w1, W)
    bk2 = _band_weights(w2, W)
    b1t = jnp.tile(b1.reshape(1, C).astype(jnp.float32), (1, W))        # (1, WC)
    b2t = jnp.tile(b2.reshape(1, C).astype(jnp.float32), (1, W))
    selt = jnp.tile(jnp.eye(C, dtype=jnp.float32), (1, W))              # (C, WC)
    sel = selt.T                                                        # (WC, C)

    out2d = pl.pallas_call(
        resnet_block_kernel,
        out_shape=jax.ShapeDtypeStruct((N, H, WC), jnp.float32),
        grid_spec=pltpu.PrefetchScalarGridSpec(
            num_scalar_prefetch=0,
            grid=(N,),
            in_specs=[
                pl.BlockSpec((None, Hp, WC), lambda n: (n, 0, 0)),   # padded input
                pl.BlockSpec((3, WC, WC), lambda n: (0, 0, 0)),      # band weights 1
                pl.BlockSpec((1, WC), lambda n: (0, 0)),             # bias 1 (tiled)
                pl.BlockSpec((3, WC, WC), lambda n: (0, 0, 0)),      # band weights 2
                pl.BlockSpec((1, WC), lambda n: (0, 0)),             # bias 2 (tiled)
                pl.BlockSpec((WC, C), lambda n: (0, 0)),             # selector
                pl.BlockSpec((C, WC), lambda n: (0, 0)),             # selector^T
            ],
            out_specs=pl.BlockSpec((None, H, WC), lambda n: (n, 0, 0)),
            scratch_shapes=[pltpu.VMEM((Hp, WC), jnp.float32)],
        ),
        compiler_params=pltpu.CompilerParams(
            dimension_semantics=("parallel",),
            vmem_limit_bytes=32 * 1024 * 1024,
        ),
    )(xr, bk1, b1t, bk2, b2t, sel, selt)

    out = out2d.reshape(N, H, W, C)
    return jnp.transpose(out, (0, 3, 1, 2))                             # NCHW


def resnet_block_ref(x_nchw, w1, b1, w2, b2):
    """Pure-JAX reference (same math, for verification)."""
    x = jnp.transpose(x_nchw, (0, 2, 3, 1))

    def conv(h, w, b):
        hp = jnp.pad(h, ((0, 0), (1, 1), (1, 1), (0, 0)), mode="reflect")
        y = jax.lax.conv_general_dilated(
            hp, w, (1, 1), "VALID", dimension_numbers=("NHWC", "HWIO", "NHWC"))
        return y + b

    def inorm(h):
        m = jnp.mean(h, axis=(1, 2), keepdims=True)
        v = jnp.mean((h - m) ** 2, axis=(1, 2), keepdims=True)
        return (h - m) * jax.lax.rsqrt(v + EPS)

    h = jnp.maximum(inorm(conv(x, w1, b1)), 0.0)
    y = inorm(conv(h, w2, b2))
    return jnp.transpose(x + y, (0, 3, 1, 2))


def _run_check(N, C, H, W, seed=0):
    key = jax.random.PRNGKey(seed)
    kx, k1, k2, k3, k4 = jax.random.split(key, 5)
    x = jax.random.normal(kx, (N, C, H, W), jnp.float32)
    w1 = jax.random.normal(k1, (3, 3, C, C), jnp.float32) * 0.2   # HWIO
    b1 = jax.random.normal(k2, (C,), jnp.float32) * 0.1
    w2 = jax.random.normal(k3, (3, 3, C, C), jnp.float32) * 0.2
    b2 = jax.random.normal(k4, (C,), jnp.float32) * 0.1

    out = jax.jit(resnet_block)(x, w1, b1, w2, b2)
    out = jax.block_until_ready(out)

    ref = resnet_block_ref(x, w1, b1, w2, b2)
    assert out.shape == (N, C, H, W)
    max_err = float(jnp.max(jnp.abs(out - ref)))
    assert max_err < 1e-3, f"mismatch vs reference ({N},{C},{H},{W}): {max_err}"


if __name__ == "__main__":
    # Primary check: same small config as before (W*C = 64 lanes).
    _run_check(2, 4, 16, 16)
    # Fully lane-dense check: W*C = 128 -> unmasked 128-lane output stores.
    _run_check(2, 8, 16, 16)
    print("KERNEL_OK")
</pallas_src>

<mosaic_0001>
module attributes {stable_mosaic.version = 11 : i64} {
  func.func @resnet_block_kernel(%arg0: i32, %arg1: memref<1x18x64xf32, #tpu.memory_space<vmem>>, %arg2: memref<3x64x64xf32, #tpu.memory_space<vmem>>, %arg3: memref<1x64xf32, #tpu.memory_space<vmem>>, %arg4: memref<3x64x64xf32, #tpu.memory_space<vmem>>, %arg5: memref<1x64xf32, #tpu.memory_space<vmem>>, %arg6: memref<64x4xf32, #tpu.memory_space<vmem>>, %arg7: memref<4x64xf32, #tpu.memory_space<vmem>>, %arg8: memref<1x16x64xf32, #tpu.memory_space<vmem>>, %arg9: memref<18x64xf32, #tpu.memory_space<vmem>>) attributes {dimension_semantics = [#tpu.dimension_semantics<parallel>], iteration_bounds = array<i64: 2>, scalar_prefetch = 0 : i64, scratch_operands = 1 : i64, tpu.core_type = #tpu.core_type<tc>, window_params = [{transform_indices = @transform_0, window_bounds = array<i64: 1, 18, 64>}, {pipeline_mode = #tpu.pipeline_mode<synchronous>, transform_indices = @transform_1, window_bounds = array<i64: 3, 64, 64>}, {pipeline_mode = #tpu.pipeline_mode<synchronous>, transform_indices = @transform_2, window_bounds = array<i64: 1, 64>}, {pipeline_mode = #tpu.pipeline_mode<synchronous>, transform_indices = @transform_3, window_bounds = array<i64: 3, 64, 64>}, {pipeline_mode = #tpu.pipeline_mode<synchronous>, transform_indices = @transform_4, window_bounds = array<i64: 1, 64>}, {pipeline_mode = #tpu.pipeline_mode<synchronous>, transform_indices = @transform_5, window_bounds = array<i64: 64, 4>}, {pipeline_mode = #tpu.pipeline_mode<synchronous>, transform_indices = @transform_6, window_bounds = array<i64: 4, 64>}, {transform_indices = @transform_7, window_bounds = array<i64: 1, 16, 64>}]} {
    %c0 = arith.constant 0 : index
    %c0_0 = arith.constant 0 : index
    %0 = vector.load %arg6[%c0, %c0_0] : memref<64x4xf32, #tpu.memory_space<vmem>>, vector<64x4xf32>
    %c0_1 = arith.constant 0 : index
    %c0_2 = arith.constant 0 : index
    %1 = vector.load %arg7[%c0_1, %c0_2] : memref<4x64xf32, #tpu.memory_space<vmem>>, vector<4x64xf32>
    %cst = arith.constant 0.000000e+00 : f32
    %2 = vector.broadcast %cst : f32 to vector<16x64xf32>
    %c0_3 = arith.constant 0 : index
    %c0_4 = arith.constant 0 : index
    %c0_5 = arith.constant 0 : index
    %3 = vector.load %arg1[%c0_3, %c0_4, %c0_5] : memref<1x18x64xf32, #tpu.memory_space<vmem>>, vector<1x16x64xf32>
    %4 = vector.shape_cast %3 : vector<1x16x64xf32> to vector<16x64xf32>
    %c0_6 = arith.constant 0 : index
    %c0_7 = arith.constant 0 : index
    %c0_8 = arith.constant 0 : index
    %5 = vector.load %arg2[%c0_6, %c0_7, %c0_8] : memref<3x64x64xf32, #tpu.memory_space<vmem>>, vector<1x64x64xf32>
    %6 = vector.shape_cast %5 : vector<1x64x64xf32> to vector<64x64xf32>
    %cst_9 = arith.constant dense<0.000000e+00> : vector<16x64xf32>
    %7 = tpu.matmul %4, %6, %cst_9 {dimension_numbers = #tpu.dot_dimension_numbers<[1], [0], [0], [1], [0, 0, 1, 1], [], []>} : vector<16x64xf32>, vector<64x64xf32>, vector<16x64xf32> -> vector<16x64xf32>
    %8 = arith.addf %2, %7 : vector<16x64xf32>
    %c0_10 = arith.constant 0 : index
    %c1 = arith.constant 1 : index
    %c0_11 = arith.constant 0 : index
    %9 = vector.load %arg1[%c0_10, %c1, %c0_11] : memref<1x18x64xf32, #tpu.memory_space<vmem>>, vector<1x16x64xf32>
    %10 = vector.shape_cast %9 : vector<1x16x64xf32> to vector<16x64xf32>
    %c1_12 = arith.constant 1 : index
    %c0_13 = arith.constant 0 : index
    %c0_14 = arith.constant 0 : index
    %11 = vector.load %arg2[%c1_12, %c0_13, %c0_14] : memref<3x64x64xf32, #tpu.memory_space<vmem>>, vector<1x64x64xf32>
    %12 = vector.shape_cast %11 : vector<1x64x64xf32> to vector<64x64xf32>
    %cst_15 = arith.constant dense<0.000000e+00> : vector<16x64xf32>
    %13 = tpu.matmul %10, %12, %cst_15 {dimension_numbers = #tpu.dot_dimension_numbers<[1], [0], [0], [1], [0, 0, 1, 1], [], []>} : vector<16x64xf32>, vector<64x64xf32>, vector<16x64xf32> -> vector<16x64xf32>
    %14 = arith.addf %8, %13 : vector<16x64xf32>
    %c0_16 = arith.constant 0 : index
    %c2 = arith.constant 2 : index
    %c0_17 = arith.constant 0 : index
    %15 = vector.load %arg1[%c0_16, %c2, %c0_17] : memref<1x18x64xf32, #tpu.memory_space<vmem>>, vector<1x16x64xf32>
    %16 = vector.shape_cast %15 : vector<1x16x64xf32> to vector<16x64xf32>
    %c2_18 = arith.constant 2 : index
    %c0_19 = arith.constant 0 : index
    %c0_20 = arith.constant 0 : index
    %17 = vector.load %arg2[%c2_18, %c0_19, %c0_20] : memref<3x64x64xf32, #tpu.memory_space<vmem>>, vector<1x64x64xf32>
    %18 = vector.shape_cast %17 : vector<1x64x64xf32> to vector<64x64xf32>
    %cst_21 = arith.constant dense<0.000000e+00> : vector<16x64xf32>
    %19 = tpu.matmul %16, %18, %cst_21 {dimension_numbers = #tpu.dot_dimension_numbers<[1], [0], [0], [1], [0, 0, 1, 1], [], []>} : vector<16x64xf32>, vector<64x64xf32>, vector<16x64xf32> -> vector<16x64xf32>
    %20 = arith.addf %14, %19 : vector<16x64xf32>
    %c0_22 = arith.constant 0 : index
    %c0_23 = arith.constant 0 : index
    %21 = vector.load %arg3[%c0_22, %c0_23] : memref<1x64xf32, #tpu.memory_space<vmem>>, vector<1x64xf32>
    %22 = vector.broadcast %21 : vector<1x64xf32> to vector<16x64xf32>
    %23 = arith.addf %20, %22 : vector<16x64xf32>
    %cst_24 = arith.constant dense<0.000000e+00> : vector<64xf32>
    %24 = vector.multi_reduction <add>, %23, %cst_24 [0] : vector<16x64xf32> to vector<64xf32>
    %25 = vector.shape_cast %24 : vector<64xf32> to vector<1x64xf32>
    %26 = arith.mulf %23, %23 : vector<16x64xf32>
    %cst_25 = arith.constant dense<0.000000e+00> : vector<64xf32>
    %27 = vector.multi_reduction <add>, %26, %cst_25 [0] : vector<16x64xf32> to vector<64xf32>
    %28 = vector.shape_cast %27 : vector<64xf32> to vector<1x64xf32>
    %cst_26 = arith.constant dense<0.000000e+00> : vector<1x4xf32>
    %29 = tpu.matmul %25, %0, %cst_26 {dimension_numbers = #tpu.dot_dimension_numbers<[1], [0], [0], [1], [0, 0, 1, 1], [], []>} : vector<1x64xf32>, vector<64x4xf32>, vector<1x4xf32> -> vector<1x4xf32>
    %cst_27 = arith.constant 3.906250e-03 : f32
    %30 = vector.broadcast %cst_27 : f32 to vector<1x4xf32>
    %31 = arith.mulf %29, %30 : vector<1x4xf32>
    %cst_28 = arith.constant dense<0.000000e+00> : vector<1x4xf32>
    %32 = tpu.matmul %28, %0, %cst_28 {dimension_numbers = #tpu.dot_dimension_numbers<[1], [0], [0], [1], [0, 0, 1, 1], [], []>} : vector<1x64xf32>, vector<64x4xf32>, vector<1x4xf32> -> vector<1x4xf32>
    %cst_29 = arith.constant 3.906250e-03 : f32
    %33 = vector.broadcast %cst_29 : f32 to vector<1x4xf32>
    %34 = arith.mulf %32, %33 : vector<1x4xf32>
    %35 = arith.mulf %31, %31 : vector<1x4xf32>
    %36 = arith.subf %34, %35 : vector<1x4xf32>
    %cst_30 = arith.constant 0.000000e+00 : f32
    %37 = vector.broadcast %cst_30 : f32 to vector<1x4xf32>
    %38 = arith.maximumf %36, %37 : vector<1x4xf32>
    %cst_31 = arith.constant 9.99999974E-6 : f32
    %39 = vector.broadcast %cst_31 : f32 to vector<1x4xf32>
    %40 = arith.addf %38, %39 : vector<1x4xf32>
    %41 = math.rsqrt %40 : vector<1x4xf32>
    %cst_32 = arith.constant dense<0.000000e+00> : vector<1x64xf32>
    %42 = tpu.matmul %31, %1, %cst_32 {dimension_numbers = #tpu.dot_dimension_numbers<[1], [0], [0], [1], [0, 0, 1, 1], [], []>} : vector<1x4xf32>, vector<4x64xf32>, vector<1x64xf32> -> vector<1x64xf32>
    %cst_33 = arith.constant dense<0.000000e+00> : vector<1x64xf32>
    %43 = tpu.matmul %41, %1, %cst_33 {dimension_numbers = #tpu.dot_dimension_numbers<[1], [0], [0], [1], [0, 0, 1, 1], [], []>} : vector<1x4xf32>, vector<4x64xf32>, vector<1x64xf32> -> vector<1x64xf32>
    %44 = vector.broadcast %42 : vector<1x64xf32> to vector<16x64xf32>
    %45 = arith.subf %23, %44 : vector<16x64xf32>
    %46 = vector.broadcast %43 : vector<1x64xf32> to vector<16x64xf32>
    %47 = arith.mulf %45, %46 : vector<16x64xf32>
    %cst_34 = arith.constant 0.000000e+00 : f32
    %48 = vector.broadcast %cst_34 : f32 to vector<16x64xf32>
    %49 = arith.maximumf %47, %48 : vector<16x64xf32>
    %c1_35 = arith.constant 1 : index
    %c0_36 = arith.constant 0 : index
    %50 = vector.load %arg9[%c1_35, %c0_36] : memref<18x64xf32, #tpu.memory_space<vmem>>, vector<16x64xf32>
    tpu.vector_store %arg9[%c1_35, %c0_36], %49 {strides = array<i32>} : memref<18x64xf32, #tpu.memory_space<vmem>>, vector<16x64xf32>,
    %51 = vector.extract_strided_slice %49 {offsets = [1, 0], sizes = [1, 64], strides = [1, 1]} : vector<16x64xf32> to vector<1x64xf32>
    %c0_37 = arith.constant 0 : index
    %c0_38 = arith.constant 0 : index
    %52 = vector.load %arg9[%c0_37, %c0_38] : memref<18x64xf32, #tpu.memory_space<vmem>>, vector<1x64xf32>
    tpu.vector_store %arg9[%c0_37, %c0_38], %51 {strides = array<i32>} : memref<18x64xf32, #tpu.memory_space<vmem>>, vector<1x64xf32>,
    %53 = vector.extract_strided_slice %49 {offsets = [14, 0], sizes = [1, 64], strides = [1, 1]} : vector<16x64xf32> to vector<1x64xf32>
    %c17 = arith.constant 17 : index
    %c0_39 = arith.constant 0 : index
    %54 = vector.load %arg9[%c17, %c0_39] : memref<18x64xf32, #tpu.memory_space<vmem>>, vector<1x64xf32>
    tpu.vector_store %arg9[%c17, %c0_39], %53 {strides = array<i32>} : memref<18x64xf32, #tpu.memory_space<vmem>>, vector<1x64xf32>,
    %cst_40 = arith.constant 0.000000e+00 : f32
    %55 = vector.broadcast %cst_40 : f32 to vector<16x64xf32>
    %c0_41 = arith.constant 0 : index
    %c0_42 = arith.constant 0 : index
    %56 = vector.load %arg9[%c0_41, %c0_42] : memref<18x64xf32, #tpu.memory_space<vmem>>, vector<16x64xf32>
    %c0_43 = arith.constant 0 : index
    %c0_44 = arith.constant 0 : index
    %c0_45 = arith.constant 0 : index
    %57 = vector.load %arg4[%c0_43, %c0_44, %c0_45] : memref<3x64x64xf32, #tpu.memory_space<vmem>>, vector<1x64x64xf32>
    %58 = vector.shape_cast %57 : vector<1x64x64xf32> to vector<64x64xf32>
    %cst_46 = arith.constant dense<0.000000e+00> : vector<16x64xf32>
    %59 = tpu.matmul %56, %58, %cst_46 {dimension_numbers = #tpu.dot_dimension_numbers<[1], [0], [0], [1], [0, 0, 1, 1], [], []>} : vector<16x64xf32>, vector<64x64xf32>, vector<16x64xf32> -> vector<16x64xf32>
    %60 = arith.addf %55, %59 : vector<16x64xf32>
    %c1_47 = arith.constant 1 : index
    %c0_48 = arith.constant 0 : index
    %61 = vector.load %arg9[%c1_47, %c0_48] : memref<18x64xf32, #tpu.memory_space<vmem>>, vector<16x64xf32>
    %c1_49 = arith.constant 1 : index
    %c0_50 = arith.constant 0 : index
    %c0_51 = arith.constant 0 : index
    %62 = vector.load %arg4[%c1_49, %c0_50, %c0_51] : memref<3x64x64xf32, #tpu.memory_space<vmem>>, vector<1x64x64xf32>
    %63 = vector.shape_cast %62 : vector<1x64x64xf32> to vector<64x64xf32>
    %cst_52 = arith.constant dense<0.000000e+00> : vector<16x64xf32>
    %64 = tpu.matmul %61, %63, %cst_52 {dimension_numbers = #tpu.dot_dimension_numbers<[1], [0], [0], [1], [0, 0, 1, 1], [], []>} : vector<16x64xf32>, vector<64x64xf32>, vector<16x64xf32> -> vector<16x64xf32>
    %65 = arith.addf %60, %64 : vector<16x64xf32>
    %c2_53 = arith.constant 2 : index
    %c0_54 = arith.constant 0 : index
    %66 = vector.load %arg9[%c2_53, %c0_54] : memref<18x64xf32, #tpu.memory_space<vmem>>, vector<16x64xf32>
    %c2_55 = arith.constant 2 : index
    %c0_56 = arith.constant 0 : index
    %c0_57 = arith.constant 0 : index
    %67 = vector.load %arg4[%c2_55, %c0_56, %c0_57] : memref<3x64x64xf32, #tpu.memory_space<vmem>>, vector<1x64x64xf32>
    %68 = vector.shape_cast %67 : vector<1x64x64xf32> to vector<64x64xf32>
    %cst_58 = arith.constant dense<0.000000e+00> : vector<16x64xf32>
    %69 = tpu.matmul %66, %68, %cst_58 {dimension_numbers = #tpu.dot_dimension_numbers<[1], [0], [0], [1], [0, 0, 1, 1], [], []>} : vector<16x64xf32>, vector<64x64xf32>, vector<16x64xf32> -> vector<16x64xf32>
    %70 = arith.addf %65, %69 : vector<16x64xf32>
    %c0_59 = arith.constant 0 : index
    %c0_60 = arith.constant 0 : index
    %71 = vector.load %arg5[%c0_59, %c0_60] : memref<1x64xf32, #tpu.memory_space<vmem>>, vector<1x64xf32>
    %72 = vector.broadcast %71 : vector<1x64xf32> to vector<16x64xf32>
    %73 = arith.addf %70, %72 : vector<16x64xf32>
    %cst_61 = arith.constant dense<0.000000e+00> : vector<64xf32>
    %74 = vector.multi_reduction <add>, %73, %cst_61 [0] : vector<16x64xf32> to vector<64xf32>
    %75 = vector.shape_cast %74 : vector<64xf32> to vector<1x64xf32>
    %76 = arith.mulf %73, %73 : vector<16x64xf32>
    %cst_62 = arith.constant dense<0.000000e+00> : vector<64xf32>
    %77 = vector.multi_reduction <add>, %76, %cst_62 [0] : vector<16x64xf32> to vector<64xf32>
    %78 = vector.shape_cast %77 : vector<64xf32> to vector<1x64xf32>
    %cst_63 = arith.constant dense<0.000000e+00> : vector<1x4xf32>
    %79 = tpu.matmul %75, %0, %cst_63 {dimension_numbers = #tpu.dot_dimension_numbers<[1], [0], [0], [1], [0, 0, 1, 1], [], []>} : vector<1x64xf32>, vector<64x4xf32>, vector<1x4xf32> -> vector<1x4xf32>
    %cst_64 = arith.constant 3.906250e-03 : f32
    %80 = vector.broadcast %cst_64 : f32 to vector<1x4xf32>
    %81 = arith.mulf %79, %80 : vector<1x4xf32>
    %cst_65 = arith.constant dense<0.000000e+00> : vector<1x4xf32>
    %82 = tpu.matmul %78, %0, %cst_65 {dimension_numbers = #tpu.dot_dimension_numbers<[1], [0], [0], [1], [0, 0, 1, 1], [], []>} : vector<1x64xf32>, vector<64x4xf32>, vector<1x4xf32> -> vector<1x4xf32>
    %cst_66 = arith.constant 3.906250e-03 : f32
    %83 = vector.broadcast %cst_66 : f32 to vector<1x4xf32>
    %84 = arith.mulf %82, %83 : vector<1x4xf32>
    %85 = arith.mulf %81, %81 : vector<1x4xf32>
    %86 = arith.subf %84, %85 : vector<1x4xf32>
    %cst_67 = arith.constant 0.000000e+00 : f32
    %87 = vector.broadcast %cst_67 : f32 to vector<1x4xf32>
    %88 = arith.maximumf %86, %87 : vector<1x4xf32>
    %cst_68 = arith.constant 9.99999974E-6 : f32
    %89 = vector.broadcast %cst_68 : f32 to vector<1x4xf32>
    %90 = arith.addf %88, %89 : vector<1x4xf32>
    %91 = math.rsqrt %90 : vector<1x4xf32>
    %cst_69 = arith.constant dense<0.000000e+00> : vector<1x64xf32>
    %92 = tpu.matmul %81, %1, %cst_69 {dimension_numbers = #tpu.dot_dimension_numbers<[1], [0], [0], [1], [0, 0, 1, 1], [], []>} : vector<1x4xf32>, vector<4x64xf32>, vector<1x64xf32> -> vector<1x64xf32>
    %cst_70 = arith.constant dense<0.000000e+00> : vector<1x64xf32>
    %93 = tpu.matmul %91, %1, %cst_70 {dimension_numbers = #tpu.dot_dimension_numbers<[1], [0], [0], [1], [0, 0, 1, 1], [], []>} : vector<1x4xf32>, vector<4x64xf32>, vector<1x64xf32> -> vector<1x64xf32>
    %94 = vector.broadcast %92 : vector<1x64xf32> to vector<16x64xf32>
    %95 = arith.subf %73, %94 : vector<16x64xf32>
    %96 = vector.broadcast %93 : vector<1x64xf32> to vector<16x64xf32>
    %97 = arith.mulf %95, %96 : vector<16x64xf32>
    %c0_71 = arith.constant 0 : index
    %c1_72 = arith.constant 1 : index
    %c0_73 = arith.constant 0 : index
    %98 = vector.load %arg1[%c0_71, %c1_72, %c0_73] : memref<1x18x64xf32, #tpu.memory_space<vmem>>, vector<1x16x64xf32>
    %99 = vector.shape_cast %98 : vector<1x16x64xf32> to vector<16x64xf32>
    %100 = arith.addf %99, %97 : vector<16x64xf32>
    %c0_74 = arith.constant 0 : index
    %c0_75 = arith.constant 0 : index
    %c0_76 = arith.constant 0 : index
    %101 = vector.load %arg8[%c0_74, %c0_75, %c0_76] : memref<1x16x64xf32, #tpu.memory_space<vmem>>, vector<1x16x64xf32>
    %102 = vector.shape_cast %101 : vector<1x16x64xf32> to vector<16x64xf32>
    %103 = vector.shape_cast %100 : vector<16x64xf32> to vector<1x16x64xf32>
    tpu.vector_store %arg8[%c0_74, %c0_75, %c0_76], %103 {strides = array<i32>} : memref<1x16x64xf32, #tpu.memory_space<vmem>>, vector<1x16x64xf32>,
    return
  }
  func.func @transform_0(%arg0: i32) -> (i32, i32, i32) {
    %c0_i32 = arith.constant 0 : i32
    %c0_i32_0 = arith.constant 0 : i32
    %c0_i32_1 = arith.constant 0 : i32
    return %arg0, %c0_i32, %c0_i32_0 : i32, i32, i32
  }
  func.func @transform_1(%arg0: i32) -> (i32, i32, i32) {
    %c0_i32 = arith.constant 0 : i32
    %c0_i32_0 = arith.constant 0 : i32
    %c0_i32_1 = arith.constant 0 : i32
    %c0_i32_2 = arith.constant 0 : i32
    return %c0_i32, %c0_i32_0, %c0_i32_1 : i32, i32, i32
  }
  func.func @transform_2(%arg0: i32) -> (i32, i32) {
    %c0_i32 = arith.constant 0 : i32
    %c0_i32_0 = arith.constant 0 : i32
    %c0_i32_1 = arith.constant 0 : i32
    return %c0_i32, %c0_i32_0 : i32, i32
  }
  func.func @transform_3(%arg0: i32) -> (i32, i32, i32) {
    %c0_i32 = arith.constant 0 : i32
    %c0_i32_0 = arith.constant 0 : i32
    %c0_i32_1 = arith.constant 0 : i32
    %c0_i32_2 = arith.constant 0 : i32
    return %c0_i32, %c0_i32_0, %c0_i32_1 : i32, i32, i32
  }
  func.func @transform_4(%arg0: i32) -> (i32, i32) {
    %c0_i32 = arith.constant 0 : i32
    %c0_i32_0 = arith.constant 0 : i32
    %c0_i32_1 = arith.constant 0 : i32
    return %c0_i32, %c0_i32_0 : i32, i32
  }
  func.func @transform_5(%arg0: i32) -> (i32, i32) {
    %c0_i32 = arith.constant 0 : i32
    %c0_i32_0 = arith.constant 0 : i32
    %c0_i32_1 = arith.constant 0 : i32
    return %c0_i32, %c0_i32_0 : i32, i32
  }
  func.func @transform_6(%arg0: i32) -> (i32, i32) {
    %c0_i32 = arith.constant 0 : i32
    %c0_i32_0 = arith.constant 0 : i32
    %c0_i32_1 = arith.constant 0 : i32
    return %c0_i32, %c0_i32_0 : i32, i32
  }
  func.func @transform_7(%arg0: i32) -> (i32, i32, i32) {
    %c0_i32 = arith.constant 0 : i32
    %c0_i32_0 = arith.constant 0 : i32
    %c0_i32_1 = arith.constant 0 : i32
    return %arg0, %c0_i32, %c0_i32_0 : i32, i32, i32
  }
}

</mosaic_0001>

<bundles_post_ra>
// kernel: tile.25
= control target key start
LH: loop header
LB: loop body
LE: loop exit
PB: predicated region body
PF: predicated region fallthrough
CT: control target
= control target key end

     0   :  { %vm6_vm0 = vcmask 1043458   ;;  %s11_s6 = smov 3  ;;  %s14_s7 = smov 12  ;;  %vm8_vm1 = vcmask 31744   ;;  %vm20_vm2 = vcmask 523744   ;;  %vm32_vm3 = vcmask 490944   ;;  %s383_s0 = inlined_call_operand.vmem [shape: f32[4,16,4], index: 0, kind: input, shape index: {}]   ;;  %s384_s1 = inlined_call_operand.vmem [shape: f32[4,64], index: 1, kind: output, shape index: {}]  }
   0x1   :  { %v198_v0 = vld [vmem:[%s383_s0 + $0xf] ss:$16 sm:%s11_s6]   ;;  %s35_s12 = smov 3  ;;  %s38_s15 = smov 12  ;;  %vm44_vm4 = vcmask 458144   ;;  %vm56_vm5 = vcmask 425344  }
   0x2   :  { %v199_v1 = vld [vmem:[%s383_s0 + $0xf] ss:$16 sm:%s14_s7]   ;;  %v202_v3 = vld [vmem:[%s383_s0 + $0xd] ss:$16 sm:%s35_s12]   ;;  %s243_s16 = smov 60   ;;  %s23_s19 = smov 3 }
   0x3   :  { %v17_v2 = vsel %vm6_vm0, %v199_v1, %v198_v0  ;;  %v203_v4 = vld [vmem:[%s383_s0 + $0xd] ss:$16 sm:%s38_s15]   ;;  %s26_s20 = smov 12  ;;  %v200_v6 = vld [vmem:[%s383_s0 + $0xe] ss:$16 sm:%s23_s19]   ;;  %s47_s25 = smov 3 }
   0x4   :  { %18 = vrot.lane.b32.xlu0 %v17_v2, %s243_s16  ;;  %v41_v5 = vsel %vm6_vm0, %v203_v4, %v202_v3  ;;  %v201_v7 = vld [vmem:[%s383_s0 + $0xe] ss:$16 sm:%s26_s20]   ;;  %s244_s26 = smov 52   ;;  %s50_s29 = smov 12  ;;  %vm68_vm6 = vcmask 392544   ;;  %vm80_vm7 = vcmask 359744  }
   0x5   :  { %42 = vrot.lane.b32.xlu1 %v41_v5, %s244_s26  ;;  %v29_v8 = vsel %vm6_vm0, %v201_v7, %v200_v6  ;;  %v204_v9 = vld [vmem:[%s383_s0 + $0xc] ss:$16 sm:%s47_s25]   ;;  %s59_s3 = smov 3  ;;  %s62_s4 = smov 12  ;;  %vm92_vm8 = vcmask 326944   ;;  %vm104_vm9 = vcmask 294144  }
   0x6   :  { %v205_v10 = vld [vmem:[%s383_s0 + $0xc] ss:$16 sm:%s50_s29]   ;;  %s245_s5 = smov 56   ;;  %v206_v12 = vld [vmem:[%s383_s0 + $0xb] ss:$16 sm:%s59_s3]   ;;  %s71_s8 = smov 3 }
   0x7   :  { %v53_v11 = vsel %vm6_vm0, %v205_v10, %v204_v9  ;;  %v207_v13 = vld [vmem:[%s383_s0 + $0xb] ss:$16 sm:%s62_s4]   ;;  %v208_v14 = vld [vmem:[%s383_s0 + $0xa] ss:$16 sm:%s71_s8]   ;;  %s74_s13 = smov 12  ;;  %s246_s14 = smov 48  }
   0x8   :  { %30 = vrot.lane.b32.xlu0 %v29_v8, %s245_s5  ;;  %v65_v15 = vsel %vm6_vm0, %v207_v13, %v206_v12  ;;  %v209_v16 = vld [vmem:[%s383_s0 + $0xa] ss:$16 sm:%s74_s13]   ;;  %s83_s17 = smov 3  ;;  %s86_s18 = smov 12  ;;  %vm116_vm10 = vcmask 261344   ;;  %vm128_vm11 = vcmask 228544  }
   0x9   :  { %54 = vrot.lane.b32.xlu1 %v53_v11, %s246_s14  ;;  %v77_v17 = vsel %vm6_vm0, %v209_v16, %v208_v14  ;;  %v210_v18 = vld [vmem:[%s383_s0 + $0x9] ss:$16 sm:%s83_s17]   ;;  %s95_s23 = smov 3  ;;  %s247_s24 = smov 44   ;;  %vm140_vm12 = vcmask 195744   ;;  %vm152_vm13 = vcmask 162944  }
   0xa   :  { %v211_v19 = vld [vmem:[%s383_s0 + $0x9] ss:$16 sm:%s86_s18]   ;;  %v212_v20 = vld [vmem:[%s383_s0 + $0x8] ss:$16 sm:%s95_s23]   ;;  %s98_s27 = smov 12  ;;  %s107_s30 = smov 3 }
   0xb   :  { %v89_v21 = vsel %vm6_vm0, %v211_v19, %v210_v18  ;;  %v213_v22 = vld [vmem:[%s383_s0 + $0x8] ss:$16 sm:%s98_s27]   ;;  %s110_s2 = smov 12  ;;  %s248_s3 = smov 40   ;;  %v214_v23 = vld [vmem:[%s383_s0 + $0x7] ss:$16 sm:%s107_s30]  }
   0xc   :  { %66 = vrot.lane.b32.xlu0 %v65_v15, %s247_s24  ;;  %s119_s6 = smov 3  ;;  %v101_v24 = vsel %vm6_vm0, %v213_v22, %v212_v20  ;;  %v215_v25 = vld [vmem:[%s383_s0 + $0x7] ss:$16 sm:%s110_s2]   ;;  %s122_s11 = smov 12  ;;  %vm164_vm14 = vcmask 130144   ;;  %vm176_vm15 = vcmask 97344  }
   0xd   :  { %78 = vrot.lane.b32.xlu1 %v77_v17, %s248_s3  ;;  %v216_v26 = vld [vmem:[%s383_s0 + $0x6] ss:$16 sm:%s119_s6]   ;;  %s249_s12 = smov 36   ;;  %s131_s15 = smov 3  ;;  %v113_v28 = vsel %vm6_vm0, %v215_v25, %v214_v23 }
   0xe   :  { %v217_v27 = vld [vmem:[%s383_s0 + $0x6] ss:$16 sm:%s122_s11]   ;;  %s134_s16 = smov 12  ;;  %v218_v29 = vld [vmem:[%s383_s0 + $0x5] ss:$16 sm:%s131_s15]   ;;  %s143_s19 = smov 3 }
   0xf   :  { %s250_s20 = smov 32   ;;  %v219_v30 = vld [vmem:[%s383_s0 + $0x5] ss:$16 sm:%s134_s16]   ;;  %s146_s23 = smov 12  ;;  %v125_v31 = vsel %vm6_vm0, %v217_v27, %v216_v26  ;;  %v220_v32 = vld [vmem:[%s383_s0 + $0x4] ss:$16 sm:%s143_s19]  }
  0x10   :  { %90 = vrot.lane.b32.xlu0 %v89_v21, %s249_s12  ;;  %s155_s26 = smov 3  ;;  %s158_s27 = smov 12  ;;  %v221_v33 = vld [vmem:[%s383_s0 + $0x4] ss:$16 sm:%s146_s23]   ;;  %v137_v34 = vsel %vm6_vm0, %v219_v30, %v218_v29 }
  0x11   :  { %102 = vrot.lane.b32.xlu1 %v101_v24, %s250_s20  ;;  %s251_s28 = smov 28   ;;  %s167_s2 = smov 3  ;;  %v222_v35 = vld [vmem:[%s383_s0 + $0x3] ss:$16 sm:%s155_s26]   ;;  %v149_v37 = vsel %vm6_vm0, %v221_v33, %v220_v32 }
  0x12   :  { %s170_s5 = smov 12  ;;  %s252_s6 = smov 24   ;;  %v223_v36 = vld [vmem:[%s383_s0 + $0x3] ss:$16 sm:%s158_s27]   ;;  %v224_v38 = vld [vmem:[%s383_s0 + $0x2] ss:$16 sm:%s167_s2]  }
  0x13   :  { %s179_s9 = smov 3  ;;  %v225_v39 = vld [vmem:[%s383_s0 + $0x2] ss:$16 sm:%s170_s5]   ;;  %s182_s14 = smov 12  ;;  %v161_v41 = vsel %vm6_vm0, %v223_v36, %v222_v35 }
  0x14   :  { %114 = vrot.lane.b32.xlu0 %v113_v28, %s251_s28  ;;  %s2_s15 = smov 3  ;;  %s253_s16 = smov 20   ;;  %v226_v42 = vld [vmem:[%s383_s0 + $0x1] ss:$16 sm:%s179_s9]   ;;  %v173_v46 = vsel %vm6_vm0, %v225_v39, %v224_v38 }
  0x15   :  { %126 = vrot.lane.b32.xlu1 %v125_v31, %s252_s6  ;;  %v3_v40 = vld [vmem:[%s383_s0] ss:$16 sm:%s2_s15]   ;;  %s4_s19 = smov 12  ;;  %s254_s24 = smov 16  }
  0x16   :  { %v5_v43 = vld [vmem:[%s383_s0] ss:$16 sm:%s4_s19]   ;;  %v227_v44 = vld [vmem:[%s383_s0 + $0x1] ss:$16 sm:%s182_s14]   ;;  %s255_s0 = smov 12   ;;  %s256_s27 = smov 8  }
  0x17   :  { %v7_v45 = vsel %vm6_vm0, %v5_v43, %v3_v40  ;;  %v185_v47 = vsel %vm6_vm0, %v227_v44, %v226_v42  ;;  %s257_s28 = smov 4   ;;  %vm188_vm0 = vcmask 64544  }
  0x18   :  { %138 = vrot.lane.b32.xlu0 %v137_v34, %s253_s16  ;;  %9 = vst.msk [vmem:[#allocation0] sm:$0xf] %vm8_vm1, %v7_v45  }
  0x19   :  { %150 = vrot.lane.b32.xlu1 %v149_v37, %s254_s24 }
  0x1c   :  { %162 = vrot.lane.b32.xlu0 %v161_v41, %s255_s0 }
  0x1d   :  { %174 = vrot.lane.b32.xlu1 %v173_v46, %s256_s27 }
  0x20   :  { %186 = vrot.lane.b32.xlu0 %v185_v47, %s257_s28 }
  0x76   :  { %v19_v48 = vpop.permute.xlu0 %18  }
  0x77   :  { %21 = vst.msk [vmem:[#allocation0] sm:$0xf] %vm20_vm2, %v19_v48   ;;  %v43_v49 = vpop.permute.xlu1 %42  }
  0x7a   :  { %v31_v50 = vpop.permute.xlu0 %30  }
  0x7b   :  { %33 = vst.msk [vmem:[#allocation0] sm:$0xf] %vm32_vm3, %v31_v50   ;;  %v55_v51 = vpop.permute.xlu1 %54  }
  0x7c   :  { %45 = vst.msk [vmem:[#allocation0] sm:$0xf] %vm44_vm4, %v43_v49  }
  0x7d   :  { %57 = vst.msk [vmem:[#allocation0] sm:$0xf] %vm56_vm5, %v55_v51  }
  0x7e   :  { %v67_v52 = vpop.permute.xlu0 %66  }
  0x7f   :  { %69 = vst.msk [vmem:[#allocation0] sm:$0xf] %vm68_vm6, %v67_v52   ;;  %v79_v53 = vpop.permute.xlu1 %78  }
  0x80   :  { %81 = vst.msk [vmem:[#allocation0] sm:$0xf] %vm80_vm7, %v79_v53  }
  0x82   :  { %v91_v54 = vpop.permute.xlu0 %90  }
  0x83   :  { %93 = vst.msk [vmem:[#allocation0] sm:$0xf] %vm92_vm8, %v91_v54   ;;  %v103_v55 = vpop.permute.xlu1 %102  }
  0x84   :  { %105 = vst.msk [vmem:[#allocation0] sm:$0xf] %vm104_vm9, %v103_v55  }
  0x86   :  { %v115_v56 = vpop.permute.xlu0 %114  }
  0x87   :  { %117 = vst.msk [vmem:[#allocation0] sm:$0xf] %vm116_vm10, %v115_v56   ;;  %v127_v57 = vpop.permute.xlu1 %126  }
  0x88   :  { %129 = vst.msk [vmem:[#allocation0] sm:$0xf] %vm128_vm11, %v127_v57  }
  0x8a   :  { %v139_v58 = vpop.permute.xlu0 %138  }
  0x8b   :  { %141 = vst.msk [vmem:[#allocation0] sm:$0xf] %vm140_vm12, %v139_v58   ;;  %v151_v59 = vpop.permute.xlu1 %150  }
  0x8c   :  { %153 = vst.msk [vmem:[#allocation0] sm:$0xf] %vm152_vm13, %v151_v59  }
  0x8e   :  { %v163_v60 = vpop.permute.xlu0 %162  }
  0x8f   :  { %165 = vst.msk [vmem:[#allocation0] sm:$0xf] %vm164_vm14, %v163_v60   ;;  %v175_v61 = vpop.permute.xlu1 %174  }
  0x90   :  { %177 = vst.msk [vmem:[#allocation0] sm:$0xf] %vm176_vm15, %v175_v61  }
  0x92   :  { %v187_v62 = vpop.permute.xlu0 %186  }
  0x93   :  { %189 = vst.msk [vmem:[#allocation0] sm:$0xf] %vm188_vm0, %v187_v62  }
  0x9a   :  { %v194_v63 = vld [vmem:[#allocation0] sm:$0xf] }
  0x9b   :  { %197 = vst [vmem:[%s384_s1] sm:$0xf] %v194_v63 }

// kernel: resnet_block.1
= control target key start
LH: loop header
LB: loop body
LE: loop exit
PB: predicated region body
PF: predicated region fallthrough
CT: control target
= control target key end

     0   :  { %s2045_s24 = smov 0   ;;  %s2419_s0 = inlined_call_operand.vmem [shape: f32[2,18,64], index: 0, kind: input, shape index: {}]   ;;  %s2420_s1 = inlined_call_operand.vmem [shape: f32[3,64,64], index: 1, kind: input, shape index: {}]   ;;  %s2421_s2 = inlined_call_operand.vmem [shape: f32[1,64], index: 2, kind: input, shape index: {}]   ;;  %s2422_s3 = inlined_call_operand.vmem [shape: f32[3,64,64], index: 3, kind: input, shape index: {}]   ;;  %s2423_s4 = inlined_call_operand.vmem [shape: f32[1,64], index: 4, kind: input, shape index: {}]   ;;  %s2424_s5 = inlined_call_operand.vmem [shape: f32[64,4], index: 5, kind: input, shape index: {}]   ;;  %s2425_s6 = inlined_call_operand.vmem [shape: f32[4,64], index: 6, kind: input, shape index: {}]   ;;  %s2426_s7 = inlined_call_operand.vmem [shape: f32[2,16,64], index: 7, kind: output, shape index: {}]  }
   0x1 LB: > { %s1597_s25 = sadd.s32 4294967295, %s2001_s24   ;;  %p1601_p0 = scmp.ge.s32.totalorder %s2001_s24, 1  ;;  %s2001_s24 = sphi %s2045_s24, %s17_s24  }
   0x2   : > { %p237_p1 = scmp.lt.s32.totalorder %s2001_s24, 3 }
   0x4   : > { %p238_p2 = pnand %p1601_p0, %p237_p1 }
   0x5   : > { %p269_p3 = scmp.lt.s32.totalorder (!%p238_p2), %s1597_s25, 1 }
   0x6   : > { %241 = sbr.rel (%p238_p2) target bundleno = 1332 (0x534), region = 48 }
   0xb   : > { %v1612_v0 = vld [vmem:[%s2420_s1 + $0x78] sm:$0xff]  ;;  %v1611_v2 = vld [vmem:[%s2420_s1 + $0x70] sm:$0xff]  ;;  %v1610_v4 = vld [vmem:[%s2420_s1 + $0x68] sm:$0xff]  ;;  %s2428_s25 = smov (!%p269_p3, %s1597_s25), 1  ;;  %vm309_vm0 = vcmask 523264   ;;  %v2003_v30 = vmov 0.0  }
   0xc   : > { %v297_v1 = vld [vmem:[%s2420_s1 + $0x38] sm:$0xff]  ;;  %1770 = vmatprep.subr.mxu0 %v1612_v0  ;;  %v296_v3 = vld [vmem:[%s2420_s1 + $0x30] sm:$0xff]  ;;  %v295_v5 = vld [vmem:[%s2420_s1 + $0x28] sm:$0xff]  ;;  %s1980_s23 = smul.u32 24, %s2428_s25  ;;  %vm2004_vm1 = vmmov 0   ;;  %vm752_vm2 = vcmask 1043456  }
   0xd   : > { %1789 = vmatprep.subr.mxu1 %v297_v1  ;;  %1771 = vmatpush3.msra.mxu0 %v1612_v0  ;;  %v1609_v6 = vld [vmem:[%s2420_s1 + $0x60] sm:$0xff]  ;;  %v1608_v8 = vld [vmem:[%s2420_s1 + $0x58] sm:$0xff]  ;;  %v1607_v10 = vld [vmem:[%s2420_s1 + $0x50] sm:$0xff]  ;;  %vm748_vm3 = vcmask 31744   ;;  %vm915_vm4 = vcmask 517121   ;;  %vm917_vm5 = vcmask 522246  }
   0xe   : > { %1790 = vmatpush3.msra.mxu1 %v297_v1  ;;  %1772 = vmatprep.subr.mxu0 %v1611_v2  ;;  %v294_v7 = vld [vmem:[%s2420_s1 + $0x20] sm:$0xff]  ;;  %v293_v9 = vld [vmem:[%s2420_s1 + $0x18] sm:$0xff]  ;;  %v292_v11 = vld [vmem:[%s2420_s1 + $0x10] sm:$0xff]  ;;  %s2101_s13 = scalar_lea.vmem %s2419_s0, %s1980_s23  ;;  %s1665_s20 = sshll.u32 %s2428_s25, 4 }
   0xf   : > { %1791 = vmatprep.subr.mxu1 %v296_v3  ;;  %1773 = vmatpush3.msra.mxu0 %v1611_v2  ;;  %v1606_v12 = vld [vmem:[%s2420_s1 + $0x48] sm:$0xff]  ;;  %v1605_v14 = vld [vmem:[%s2420_s1 + $0x40] sm:$0xff]  ;;  %v1624_v20 = vld [vmem:[%s2420_s1 + $0xb8] sm:$0xff]  ;;  %s278_s23 = scalar_lea.vmem %s2426_s7, %s1665_s20 }
  0x10   : > { %1792 = vmatpush3.msra.mxu1 %v296_v3  ;;  %1774 = vmatprep.subr.mxu0 %v1610_v4  ;;  %v291_v13 = vld [vmem:[%s2420_s1 + $0x8] sm:$0xff]  ;;  %v290_v15 = vld [vmem:[%s2420_s1] sm:$0xff]  ;;  %v1623_v22 = vld [vmem:[%s2420_s1 + $0xb0] sm:$0xff] }
  0x11   : > { %1793 = vmatprep.subr.mxu1 %v295_v5  ;;  %1775 = vmatpush3.msra.mxu0 %v1610_v4  ;;  %v2110_v16 = vld [vmem:[%s2101_s13 + $0x1] sm:$0xff]  ;;  %v2114_v18 = vld [vmem:[%s2101_s13 + $0x9] sm:$0xff]  ;;  %v1620_v25 = vld [vmem:[%s2420_s1 + $0x98] sm:$0xff] }
  0x12   : > { %1794 = vmatpush3.msra.mxu1 %v295_v5  ;;  %1776 = vmatprep.subr.mxu0 %v1609_v6  ;;  %v288_v17 = vld [vmem:[%s2101_s13] sm:$0xff]  ;;  %v289_v19 = vld [vmem:[%s2101_s13 + $0x8] sm:$0xff]  ;;  %v1619_v26 = vld [vmem:[%s2420_s1 + $0x90] sm:$0xff] }
  0x13   : > { %1795 = vmatprep.subr.mxu1 %v294_v7  ;;  %1777 = vmatpush3.msra.mxu0 %v1609_v6  ;;  %v472_v21 = vld [vmem:[%s2101_s13 + $0x2] sm:$0xff]  ;;  %v473_v29 = vld [vmem:[%s2101_s13 + $0xa] sm:$0xff]  ;;  %v2155_v31 = vld [vmem:[%s2424_s5 + $0x38] sm:$0xff] }
  0x14   : > { %1796 = vmatpush3.msra.mxu1 %v294_v7  ;;  %1778 = vmatprep.subr.mxu0 %v1608_v8  ;;  %v1622_v23 = vld [vmem:[%s2420_s1 + $0xa8] sm:$0xff]  ;;  %v1621_v24 = vld [vmem:[%s2420_s1 + $0xa0] sm:$0xff]  ;;  %v2164_v32 = vld [vmem:[%s2424_s5 + $0x30] sm:$0xff] }
  0x15   : > { %1797 = vmatprep.subr.mxu1 %v293_v9  ;;  %1779 = vmatpush3.msra.mxu0 %v1608_v8  ;;  %v1618_v27 = vld [vmem:[%s2420_s1 + $0x88] sm:$0xff]  ;;  %v1617_v28 = vld [vmem:[%s2420_s1 + $0x80] sm:$0xff]  ;;  %v2191_v35 = vld [vmem:[%s2424_s5 + $0x18] sm:$0xff] }
  0x16   : > { %1798 = vmatpush3.msra.mxu1 %v293_v9  ;;  %1780 = vmatprep.subr.mxu0 %v1607_v10  ;;  %v2173_v33 = vld [vmem:[%s2424_s5 + $0x28] sm:$0xff]  ;;  %v2182_v34 = vld [vmem:[%s2424_s5 + $0x20] sm:$0xff]  ;;  %v2200_v36 = vld [vmem:[%s2424_s5 + $0x10] sm:$0xff] }
  0x17   : > { %1799 = vmatprep.subr.mxu1 %v292_v11  ;;  %1781 = vmatpush3.msra.mxu0 %v1607_v10  ;;  %v2206_v37 = vld [vmem:[%s2424_s5 + $0x8] sm:$0xff]  ;;  %v2215_v38 = vld [vmem:[%s2424_s5] sm:$0xff] }
  0x18   : > { %1800 = vmatpush3.msra.mxu1 %v292_v11  ;;  %1782 = vmatprep.subr.mxu0 %v1606_v12  ;;  %v1627_v45 = vld [vmem:[%s2421_s2] ss:$0 sm:$0xff] }
  0x19   : > { %1801 = vmatprep.subr.mxu1 %v291_v13  ;;  %1783 = vmatpush3.msra.mxu0 %v1606_v12  ;;  %v2252_v8 = vld [vmem:[%s2425_s6] sm:$0xf] }
  0x1a   : > { %1802 = vmatpush3.msra.mxu1 %v291_v13  ;;  %1784 = vmatprep.subr.mxu0 %v1605_v14 }
  0x1b   : > { %1803 = vmatprep.subr.mxu1 %v290_v15  ;;  %1785 = vmatpush3.msra.mxu0 %v1605_v14 }
  0x1c   : > { %1786 = vmatprep.mubr.msk.f32.mxu0 %vm309_vm0, %v2110_v16  ;;  %1804 = vmatpush3.msra.mxu1 %v290_v15 }
  0x1d   : > { %1805 = vmatprep.mubr.msk.f32.mxu1 %vm309_vm0, %v288_v17  ;;  %1787 = vmatmul.mubr.msk.f32.vlgmr.msra.gmra.mxu0 %vm309_vm0, %v2114_v18 }
  0x1e   : > { %1806 = vmatmul.mubr.msk.f32.vlgmr.msra.gmra.mxu1 %vm309_vm0, %v289_v19  ;;  %1808 = vmatprep.subr.mxu0 %v1624_v20 }
  0x1f   : > { %1824 = vmatprep.mubr.msk.f32.mxu0 %vm309_vm0, %v472_v21  ;;  %1809 = vmatpush3.msra.mxu0 %v1624_v20 }
  0x20   : > { %1810 = vmatprep.subr.mxu0 %v1623_v22  ;;  %1827 = vmatprep.subr.mxu1 %v2003_v30 }
  0x21   : > { %1811 = vmatpush3.msra.mxu0 %v1623_v22  ;;  %1828 = vmatpush3.msra.mxu1 %v2155_v31  ;;  %v1641_v22 = vld [vmem:[%s2422_s3 + $0x78] sm:$0xff] }
  0x22   : > { %1812 = vmatprep.subr.mxu0 %v1622_v23  ;;  %1829 = vmatprep.subr.mxu1 %v2003_v30 }
  0x23   : > { %1813 = vmatpush3.msra.mxu0 %v1622_v23  ;;  %1830 = vmatpush3.msra.mxu1 %v2164_v32  ;;  %v928_v23 = vld [vmem:[%s2422_s3 + $0x38] sm:$0xff] }
  0x24   : > { %1814 = vmatprep.subr.mxu0 %v1621_v24  ;;  %1831 = vmatprep.subr.mxu1 %v2003_v30 }
  0x25   : > { %1815 = vmatpush3.msra.mxu0 %v1621_v24  ;;  %1832 = vmatpush3.msra.mxu1 %v2173_v33  ;;  %v1640_v24 = vld [vmem:[%s2422_s3 + $0x70] sm:$0xff] }
  0x26   : > { %1816 = vmatprep.subr.mxu0 %v1620_v25  ;;  %1833 = vmatprep.subr.mxu1 %v2003_v30 }
  0x27   : > { %1817 = vmatpush3.msra.mxu0 %v1620_v25  ;;  %1834 = vmatpush3.msra.mxu1 %v2182_v34  ;;  %v927_v25 = vld [vmem:[%s2422_s3 + $0x30] sm:$0xff] }
  0x28   : > { %1818 = vmatprep.subr.mxu0 %v1619_v26  ;;  %1835 = vmatprep.subr.mxu1 %v2003_v30 }
  0x29   : > { %1819 = vmatpush3.msra.mxu0 %v1619_v26  ;;  %1836 = vmatpush3.msra.mxu1 %v2191_v35  ;;  %v1639_v26 = vld [vmem:[%s2422_s3 + $0x68] sm:$0xff] }
  0x2a   : > { %1820 = vmatprep.subr.mxu0 %v1618_v27  ;;  %1837 = vmatprep.subr.mxu1 %v2003_v30 }
  0x2b   : > { %1821 = vmatpush3.msra.mxu0 %v1618_v27  ;;  %1838 = vmatpush3.msra.mxu1 %v2200_v36  ;;  %v926_v27 = vld [vmem:[%s2422_s3 + $0x28] sm:$0xff] }
  0x2c   : > { %1822 = vmatprep.subr.mxu0 %v1617_v28  ;;  %1839 = vmatprep.subr.mxu1 %v2003_v30 }
  0x2d   : > { %1823 = vmatpush3.msra.mxu0 %v1617_v28  ;;  %1840 = vmatpush3.msra.mxu1 %v2206_v37  ;;  %v1638_v28 = vld [vmem:[%s2422_s3 + $0x60] sm:$0xff] }
  0x2e   : > { %1825 = vmatmul.mubr.msk.f32.vlgmr.msra.gmra.mxu0 %vm309_vm0, %v473_v29  ;;  %1846 = vmatprep.subr.mxu0 %v2003_v30  ;;  %v925_v29 = vld [vmem:[%s2422_s3 + $0x20] sm:$0xff] }
  0x2f   : > { %1847 = vmatpush3.msra.mxu0 %v2155_v31  ;;  %1843 = vmatprep.mubr.msk.f32.mxu1 %vm2004_vm1, %v2003_v30 }
  0x30   : > { %1848 = vmatprep.subr.mxu0 %v2003_v30  ;;  %1841 = vmatprep.subr.mxu1 %v2003_v30 }
  0x31   : > { %1849 = vmatpush3.msra.mxu0 %v2164_v32  ;;  %1842 = vmatpush3.msra.mxu1 %v2215_v38 }
  0x32   : > { %1850 = vmatprep.subr.mxu0 %v2003_v30  ;;  %1862 = vmatprep.mubr.msk.f32.mxu0 %vm2004_vm1, %v2003_v30 }
  0x33   : > { %1851 = vmatpush3.msra.mxu0 %v2173_v33  ;;  %1865 = vmatprep.subr.mxu1 %v2003_v30 }
  0x34   : > { %1852 = vmatprep.subr.mxu0 %v2003_v30 }
  0x35   : > { %1853 = vmatpush3.msra.mxu0 %v2182_v34 }
  0x36   : > { %1854 = vmatprep.subr.mxu0 %v2003_v30 }
  0x37   : > { %1855 = vmatpush3.msra.mxu0 %v2191_v35 }
  0x38   : > { %1856 = vmatprep.subr.mxu0 %v2003_v30 }
  0x39   : > { %1857 = vmatpush3.msra.mxu0 %v2200_v36 }
  0x3a   : > { %1858 = vmatprep.subr.mxu0 %v2003_v30 }
  0x3b   : > { %1859 = vmatpush3.msra.mxu0 %v2206_v37 }
  0x3c   : > { %1860 = vmatprep.subr.mxu0 %v2003_v30 }
  0x3d   : > { %1861 = vmatpush3.msra.mxu0 %v2215_v38 }
  0x3e   : > { %1894 = vmatprep.subr.mxu0 %v928_v23 }
  0xdd   : > { %v1788_v39 = vpop.f32.mrf.mxu0 }
  0xde   : > { %v1807_v40 = vpop.f32.mrf.mxu1 }
  0xdf   : > { %v382_v41 = vpop.f32.mrf.mxu0  ;;  %v469_v43 = vadd.f32 %v1807_v40, %v1788_v39  ;;  %v1637_v39 = vld [vmem:[%s2422_s3 + $0x58] sm:$0xff] }
  0xe0   : > { %v463_v42 = vpop.f32.mrf.mxu1  ;;  %v924_v40 = vld [vmem:[%s2422_s3 + $0x18] sm:$0xff] }
  0xe1   : > { %v464_v46 = vadd.f32 %v463_v42, %v382_v41  ;;  %v1636_v41 = vld [vmem:[%s2422_s3 + $0x50] sm:$0xff] }
  0xe2   : > { %v923_v42 = vld [vmem:[%s2422_s3 + $0x10] sm:$0xff] }
  0xee   : > { %v1826_v44 = vpop.f32.mrf.mxu0 }
  0xef   : > { %v565_v47 = vadd.f32 %v1826_v44, %v469_v43  ;;  %v1635_v43 = vld [vmem:[%s2422_s3 + $0x48] sm:$0xff] }
  0xf0   : > { %v555_v48 = vpop.f32.mrf.mxu0  ;;  %v922_v44 = vld [vmem:[%s2422_s3 + $0x8] sm:$0xff] }
  0xf1   : > { %v2231_v49 = vadd.f32 %v1627_v45, %v565_v47  ;;  %v564_v50 = vadd.f32 %v555_v48, %v464_v46  ;;  %v921_v46 = vld [vmem:[%s2422_s3] sm:$0xff]  ;;  %v1653_v47 = vld [vmem:[%s2422_s3 + $0xb8] sm:$0xff] }
  0xf3   : > { %v585_v51 = vmul.f32 %v2231_v49, %v2231_v49  ;;  %v2235_v52 = vadd.f32 %v1627_v45, %v564_v50  ;;  %v576_v53 = vsel %vm309_vm0, %v2231_v49, 0.0  ;;  %v1634_v45 = vld [vmem:[%s2422_s3 + $0x40] sm:$0xff] }
  0xf5   : > { %v575_v54 = vsel %vm309_vm0, %v2235_v52, 0.0  ;;  %v584_v55 = vmul.f32 %v2235_v52, %v2235_v52  ;;  %v587_v57 = vsel %vm309_vm0, %v585_v51, 0.0  ;;  %v899_v51 = vlaneseq }
  0xf6   : > { %v577_v56 = vadd.f32 %v576_v53, %v575_v54 }
  0xf7   : > { %v586_v58 = vsel %vm309_vm0, %v584_v55, 0.0  ;;  %v900_v53 = vshrl.u32 %v899_v51, 7 }
  0xf8   : > { %v578_v59 = vrot.slane %v577_v56, 4  ;;  %v588_v60 = vadd.f32 %v587_v57, %v586_v58 }
  0xf9   : > { %v2315_v54 = vsub.s32 0, %v900_v53 }
  0xfa   : > { %v579_v61 = vadd.f32 %v578_v59, %v577_v56  ;;  %v589_v62 = vrot.slane %v588_v60, 4 }
  0xfc   : > { %v580_v63 = vrot.slane %v579_v61, 2  ;;  %v590_v0 = vadd.f32 %v589_v62, %v588_v60 }
  0xfe   : > { %v581_v1 = vadd.f32 %v580_v63, %v579_v61  ;;  %v591_v2 = vrot.slane %v590_v0, 2 }
 0x100   : > { %v582_v3 = vrot.slane %v581_v1, 1  ;;  %v592_v4 = vadd.f32 %v591_v2, %v590_v0 }
 0x102   : > { %v583_v5 = vadd.f32 %v582_v3, %v581_v1  ;;  %v593_v6 = vrot.slane %v592_v4, 1  ;;  %v1652_v3 = vld [vmem:[%s2422_s3 + $0xb0] sm:$0xff] }
 0x104   : > { %1844 = vmatmul.mubr.msk.f32.vlgmr.msra.gmra.mxu1 %vm309_vm0, %v583_v5  ;;  %v594_v7 = vadd.f32 %v593_v6, %v592_v4  ;;  %v1651_v5 = vld [vmem:[%s2422_s3 + $0xa8] sm:$0xff]  ;;  %v1650_v6 = vld [vmem:[%s2422_s3 + $0xa0] sm:$0xff] }
 0x105   : > { %1867 = vmatprep.mubr.msk.f32.mxu1 %vm2004_vm1, %v2003_v30  ;;  %1866 = vmatpush3.msk.msra.mxu1 %vm752_vm2, %v2252_v8 }
 0x106   : > { %1863 = vmatmul.mubr.msk.f32.vlgmr.msra.gmra.mxu0 %vm309_vm0, %v594_v7  ;;  %1870 = vmatprep.subr.mxu1 %v2003_v30  ;;  %v1649_v7 = vld [vmem:[%s2422_s3 + $0x98] sm:$0xff] }
 0x107   : > { %1895 = vmatpush3.msra.mxu0 %v928_v23 }
 0x108   : > { %1896 = vmatprep.subr.mxu0 %v927_v25 }
 0x109   : > { %1897 = vmatpush3.msra.mxu0 %v927_v25 }
 0x10a   : > { %1898 = vmatprep.subr.mxu0 %v926_v27 }
 0x10b   : > { %1899 = vmatpush3.msra.mxu0 %v926_v27 }
 0x10c   : > { %1900 = vmatprep.subr.mxu0 %v925_v29 }
 0x10d   : > { %1901 = vmatpush3.msra.mxu0 %v925_v29 }
 0x10e   : > { %1902 = vmatprep.subr.mxu0 %v924_v40 }
 0x10f   : > { %1903 = vmatpush3.msra.mxu0 %v924_v40 }
 0x110   : > { %1904 = vmatprep.subr.mxu0 %v923_v42 }
 0x111   : > { %1905 = vmatpush3.msra.mxu0 %v923_v42 }
 0x112   : > { %1906 = vmatprep.subr.mxu0 %v922_v44 }
 0x113   : > { %1907 = vmatpush3.msra.mxu0 %v922_v44 }
 0x114   : > { %1908 = vmatprep.subr.mxu0 %v921_v46 }
 0x115   : > { %1909 = vmatpush3.msra.mxu0 %v921_v46 }
 0x116   : > { %1932 = vmatprep.subr.mxu0 %v2003_v30 }
 0x1c4   : > { %v664_v9 = vpop.f32.mrf.mxu1 }
 0x1c5   : > { %v668_v10 = vmul.f32 0.00390625, %v664_v9  ;;  %v1648_v9 = vld [vmem:[%s2422_s3 + $0x90] sm:$0xff] }
 0x1c6   : > { %v1845_v11 = vpop.f32.mrf.mxu1  ;;  %v738_v12 = vpop.f32.mrf.mxu0 }
 0x1c7   : > { %v743_v13 = vmul.f32 %v668_v10, %v668_v10  ;;  %v742_v14 = vmul.f32 0.00390625, %v738_v12  ;;  %1868 = vmatmul.mubr.msk.f32.vlgmr.msra.gmra.mxu1 %vm748_vm3, %v668_v10  ;;  %v1647_v10 = vld [vmem:[%s2422_s3 + $0x88] sm:$0xff]  ;;  %v1646_v11 = vld [vmem:[%s2422_s3 + $0x80] sm:$0xff] }
 0x1c8   : > { %v1864_v15 = vpop.f32.mrf.mxu0  ;;  %1871 = vmatpush3.msk.msra.mxu1 %vm752_vm2, %v2252_v8  ;;  %1872 = vmatprep.mubr.msk.f32.mxu1 %vm2004_vm1, %v2003_v30 }
 0x1c9   : > { %v744_v17 = vsub.f32 %v742_v14, %v743_v13  ;;  %1875 = vmatprep.subr.mxu1 %v1641_v22 }
 0x1cb   : > { %v745_v19 = vmax.f32 %v744_v17, 0.0 }
 0x1cd   : > { %v746_v20 = vadd.f32 1e-05, %v745_v19 }
 0x1cf   : > { %1991 = vrsqrt.f32 %v746_v20 }
 0x1dc   : > { %v1992_v21 = vpop.eup %1991 }
 0x1dd   : > { %1873 = vmatmul.mubr.msk.f32.vlgmr.msra.gmra.mxu1 %vm748_vm3, %v1992_v21 }
 0x1de   : > { %1876 = vmatpush3.msra.mxu1 %v1641_v22 }
 0x1df   : > { %1877 = vmatprep.subr.mxu1 %v1640_v24 }
 0x1e0   : > { %1878 = vmatpush3.msra.mxu1 %v1640_v24 }
 0x1e1   : > { %1879 = vmatprep.subr.mxu1 %v1639_v26 }
 0x1e2   : > { %1880 = vmatpush3.msra.mxu1 %v1639_v26 }
 0x1e3   : > { %1881 = vmatprep.subr.mxu1 %v1638_v28 }
 0x1e4   : > { %1882 = vmatpush3.msra.mxu1 %v1638_v28 }
 0x1e5   : > { %1883 = vmatprep.subr.mxu1 %v1637_v39 }
 0x1e6   : > { %1884 = vmatpush3.msra.mxu1 %v1637_v39 }
 0x1e7   : > { %1885 = vmatprep.subr.mxu1 %v1636_v41 }
 0x1e8   : > { %1886 = vmatpush3.msra.mxu1 %v1636_v41 }
 0x1e9   : > { %1887 = vmatprep.subr.mxu1 %v1635_v43 }
 0x1ea   : > { %1888 = vmatpush3.msra.mxu1 %v1635_v43 }
 0x1eb   : > { %1889 = vmatprep.subr.mxu1 %v1634_v45 }
 0x1ec   : > { %1890 = vmatpush3.msra.mxu1 %v1634_v45 }
 0x1ed   : > { %1913 = vmatprep.subr.mxu1 %v1653_v47 }
 0x287   : > { %v822_v48 = vpop.f32.mrf.mxu1 }
 0x288   : > { %v902_v55 = vrot.slane %v822_v48, %v2315_v54 }
 0x289   : > { %v1869_v50 = vpop.f32.mrf.mxu1 }
 0x28a   : > { %v903_v57 = vsub.f32 %v2235_v52, %v902_v55  ;;  %v904_v58 = vsub.f32 %v2231_v49, %v902_v55 }
 0x29d   : > { %v895_v56 = vpop.f32.mrf.mxu1 }
 0x29e   : > { %v908_v59 = vrot.slane %v895_v56, %v2315_v54 }
 0x29f   : > { %v1874_v60 = vpop.f32.mrf.mxu1 }
 0x2a0   : > { %v909_v61 = vmul.f32 %v908_v59, %v903_v57  ;;  %v910_v62 = vmul.f32 %v908_v59, %v904_v58 }
 0x2a2   : > { %v911_v63 = vmax.f32 %v909_v61, 0.0  ;;  %v912_v0 = vmax.f32 %v910_v62, 0.0 }
 0x2a4   : > { %913 = vst.msk [vmem:[#allocation2 + $0x1] sm:$0xff] %vm309_vm0, %v911_v63  ;;  %914 = vst.msk [vmem:[#allocation2 + $0x9] sm:$0xff] %vm309_vm0, %v912_v0 }
 0x2a5   : > { %916 = vst.msk [vmem:[#allocation2 - $0x1] sm:$0x2] %vm915_vm4, %v911_v63 }
 0x2a6   : > { %918 = vst.msk [vmem:[#allocation2 + $0xb] sm:$0x40] %vm917_vm5, %v912_v0 }
 0x2ab   : > { %v929_v1 = vld [vmem:[#allocation2 + $0x1] sm:$0xff]  ;;  %v930_v52 = vld [vmem:[#allocation2 + $0x9] sm:$0xff] }
 0x2ac   : > { %v919_v2 = vld [vmem:[#allocation2] sm:$0xff]  ;;  %1891 = vmatprep.mubr.msk.f32.mxu1 %vm309_vm0, %v929_v1  ;;  %v920_v49 = vld [vmem:[#allocation2 + $0x8] sm:$0xff] }
 0x2ad   : > { %1910 = vmatprep.mubr.msk.f32.mxu0 %vm309_vm0, %v919_v2  ;;  %1892 = vmatmul.mubr.msk.f32.vlgmr.msra.gmra.mxu1 %vm309_vm0, %v930_v52  ;;  %v1102_v4 = vld [vmem:[#allocation2 + $0x2] sm:$0xff]  ;;  %v1103_v12 = vld [vmem:[#allocation2 + $0xa] sm:$0xff] }
 0x2ae   : > { %1911 = vmatmul.mubr.msk.f32.vlgmr.msra.gmra.mxu0 %vm309_vm0, %v920_v49  ;;  %1914 = vmatpush3.msra.mxu1 %v1653_v47 }
 0x2af   : > { %1929 = vmatprep.mubr.msk.f32.mxu1 %vm309_vm0, %v1102_v4  ;;  %1915 = vmatprep.subr.mxu1 %v1652_v3 }
 0x2b0   : > { %1933 = vmatpush3.msra.mxu0 %v2155_v31  ;;  %1916 = vmatpush3.msra.mxu1 %v1652_v3 }
 0x2b1   : > { %1934 = vmatprep.subr.mxu0 %v2003_v30  ;;  %1917 = vmatprep.subr.mxu1 %v1651_v5 }
 0x2b2   : > { %1935 = vmatpush3.msra.mxu0 %v2164_v32  ;;  %1918 = vmatpush3.msra.mxu1 %v1651_v5 }
 0x2b3   : > { %1936 = vmatprep.subr.mxu0 %v2003_v30  ;;  %1919 = vmatprep.subr.mxu1 %v1650_v6 }
 0x2b4   : > { %1937 = vmatpush3.msra.mxu0 %v2173_v33  ;;  %1920 = vmatpush3.msra.mxu1 %v1650_v6 }
 0x2b5   : > { %1938 = vmatprep.subr.mxu0 %v2003_v30  ;;  %1921 = vmatprep.subr.mxu1 %v1649_v7 }
 0x2b6   : > { %1939 = vmatpush3.msra.mxu0 %v2182_v34  ;;  %1922 = vmatpush3.msra.mxu1 %v1649_v7 }
 0x2b7   : > { %1940 = vmatprep.subr.mxu0 %v2003_v30  ;;  %1923 = vmatprep.subr.mxu1 %v1648_v9 }
 0x2b8   : > { %1941 = vmatpush3.msra.mxu0 %v2191_v35  ;;  %1924 = vmatpush3.msra.mxu1 %v1648_v9 }
 0x2b9   : > { %1942 = vmatprep.subr.mxu0 %v2003_v30  ;;  %1925 = vmatprep.subr.mxu1 %v1647_v10 }
 0x2ba   : > { %1943 = vmatpush3.msra.mxu0 %v2200_v36  ;;  %1926 = vmatpush3.msra.mxu1 %v1647_v10 }
 0x2bb   : > { %1944 = vmatprep.subr.mxu0 %v2003_v30  ;;  %1927 = vmatprep.subr.mxu1 %v1646_v11 }
 0x2bc   : > { %1945 = vmatpush3.msra.mxu0 %v2206_v37  ;;  %1928 = vmatpush3.msra.mxu1 %v1646_v11 }
 0x2bd   : > { %1946 = vmatprep.subr.mxu0 %v2003_v30  ;;  %1930 = vmatmul.mubr.msk.f32.vlgmr.msra.gmra.mxu1 %vm309_vm0, %v1103_v12 }
 0x2be   : > { %1951 = vmatprep.subr.mxu1 %v2003_v30  ;;  %1947 = vmatpush3.msra.mxu0 %v2215_v38 }
 0x2bf   : > { %1952 = vmatpush3.msra.mxu1 %v2155_v31  ;;  %1948 = vmatprep.mubr.msk.f32.mxu0 %vm2004_vm1, %v2003_v30 }
 0x2c0   : > { %1953 = vmatprep.subr.mxu1 %v2003_v30  ;;  %1967 = vmatprep.mubr.msk.f32.mxu1 %vm2004_vm1, %v2003_v30 }
 0x2c1   : > { %1954 = vmatpush3.msra.mxu1 %v2164_v32  ;;  %1970 = vmatprep.subr.mxu0 %v2003_v30 }
 0x2c2   : > { %1955 = vmatprep.subr.mxu1 %v2003_v30 }
 0x2c3   : > { %1956 = vmatpush3.msra.mxu1 %v2173_v33 }
 0x2c4   : > { %1957 = vmatprep.subr.mxu1 %v2003_v30 }
 0x2c5   : > { %1958 = vmatpush3.msra.mxu1 %v2182_v34 }
 0x2c6   : > { %1959 = vmatprep.subr.mxu1 %v2003_v30 }
 0x2c7   : > { %1960 = vmatpush3.msra.mxu1 %v2191_v35  ;;  %v1656_v35 = vld [vmem:[%s2423_s4] ss:$0 sm:$0xff] }
 0x2c8   : > { %1961 = vmatprep.subr.mxu1 %v2003_v30 }
 0x2c9   : > { %1962 = vmatpush3.msra.mxu1 %v2200_v36 }
 0x2ca   : > { %1963 = vmatprep.subr.mxu1 %v2003_v30 }
 0x2cb   : > { %1964 = vmatpush3.msra.mxu1 %v2206_v37 }
 0x2cc   : > { %1965 = vmatprep.subr.mxu1 %v2003_v30 }
 0x2cd   : > { %1966 = vmatpush3.msra.mxu1 %v2215_v38 }
 0x36d   : > { %v1893_v31 = vpop.f32.mrf.mxu1 }
 0x36e   : > { %v1912_v32 = vpop.f32.mrf.mxu0 }
 0x36f   : > { %v1012_v33 = vpop.f32.mrf.mxu1  ;;  %v1099_v13 = vadd.f32 %v1912_v32, %v1893_v31 }
 0x370   : > { %v1093_v34 = vpop.f32.mrf.mxu0 }
 0x371   : > { %v1094_v15 = vadd.f32 %v1093_v34, %v1012_v33 }
 0x37d   : > { %v1931_v14 = vpop.f32.mrf.mxu1 }
 0x37e   : > { %v1195_v36 = vadd.f32 %v1931_v14, %v1099_v13 }
 0x37f   : > { %v1185_v17 = vpop.f32.mrf.mxu1 }
 0x380   : > { %v1204_v19 = vadd.f32 %v1656_v35, %v1195_v36  ;;  %v1194_v20 = vadd.f32 %v1185_v17, %v1094_v15 }
 0x382   : > { %v1215_v37 = vmul.f32 %v1204_v19, %v1204_v19  ;;  %v1203_v21 = vadd.f32 %v1656_v35, %v1194_v20  ;;  %v1206_v22 = vsel %vm309_vm0, %v1204_v19, 0.0 }
 0x384   : > { %v1205_v38 = vsel %vm309_vm0, %v1203_v21, 0.0  ;;  %v1214_v23 = vmul.f32 %v1203_v21, %v1203_v21  ;;  %v1217_v25 = vsel %vm309_vm0, %v1215_v37, 0.0 }
 0x385   : > { %v1207_v24 = vadd.f32 %v1206_v22, %v1205_v38 }
 0x386   : > { %v1216_v26 = vsel %vm309_vm0, %v1214_v23, 0.0 }
 0x387   : > { %v1208_v27 = vrot.slane %v1207_v24, 4  ;;  %v1218_v28 = vadd.f32 %v1217_v25, %v1216_v26 }
 0x389   : > { %v1209_v29 = vadd.f32 %v1208_v27, %v1207_v24  ;;  %v1219_v39 = vrot.slane %v1218_v28, 4 }
 0x38b   : > { %v1210_v40 = vrot.slane %v1209_v29, 2  ;;  %v1220_v41 = vadd.f32 %v1219_v39, %v1218_v28 }
 0x38d   : > { %v1211_v42 = vadd.f32 %v1210_v40, %v1209_v29  ;;  %v1221_v43 = vrot.slane %v1220_v41, 2 }
 0x38f   : > { %v1212_v44 = vrot.slane %v1211_v42, 1  ;;  %v1222_v45 = vadd.f32 %v1221_v43, %v1220_v41 }
 0x391   : > { %v1213_v46 = vadd.f32 %v1212_v44, %v1211_v42  ;;  %v1223_v47 = vrot.slane %v1222_v45, 1 }
 0x393   : > { %1949 = vmatmul.mubr.msk.f32.vlgmr.msra.gmra.mxu0 %vm309_vm0, %v1213_v46  ;;  %v1224_v48 = vadd.f32 %v1223_v47, %v1222_v45 }
 0x394   : > { %1971 = vmatpush3.msk.msra.mxu0 %vm752_vm2, %v2252_v8  ;;  %1972 = vmatprep.mubr.msk.f32.mxu0 %vm2004_vm1, %v2003_v30 }
 0x395   : > { %1968 = vmatmul.mubr.msk.f32.vlgmr.msra.gmra.mxu1 %vm309_vm0, %v1224_v48  ;;  %1975 = vmatprep.subr.mxu0 %v2003_v30 }
 0x453   : > { %v1294_v50 = vpop.f32.mrf.mxu0 }
 0x454   : > { %v1298_v51 = vmul.f32 0.00390625, %v1294_v50 }
 0x455   : > { %v1950_v53 = vpop.f32.mrf.mxu0  ;;  %v1368_v55 = vpop.f32.mrf.mxu1 }
 0x456   : > { %v1373_v56 = vmul.f32 %v1298_v51, %v1298_v51  ;;  %v1372_v57 = vmul.f32 0.00390625, %v1368_v55  ;;  %1973 = vmatmul.mubr.msk.f32.vlgmr.msra.gmra.mxu0 %vm748_vm3, %v1298_v51 }
 0x457   : > { %v1969_v58 = vpop.f32.mrf.mxu1  ;;  %1976 = vmatpush3.msk.msra.mxu0 %vm752_vm2, %v2252_v8  ;;  %1977 = vmatprep.mubr.msk.f32.mxu0 %vm2004_vm1, %v2003_v30 }
 0x458   : > { %v1374_v59 = vsub.f32 %v1372_v57, %v1373_v56 }
 0x45a   : > { %v1375_v60 = vmax.f32 %v1374_v59, 0.0 }
 0x45c   : > { %v1376_v61 = vadd.f32 1e-05, %v1375_v60 }
 0x45e   : > { %1993 = vrsqrt.f32 %v1376_v61 }
 0x46b   : > { %v1994_v62 = vpop.eup %1993 }
 0x46c   : > { %1978 = vmatmul.mubr.msk.f32.vlgmr.msra.gmra.mxu0 %vm748_vm3, %v1994_v62 }
 0x516   : > { %v1447_v63 = vpop.f32.mrf.mxu0 }
 0x517   : > { %v1527_v1 = vrot.slane %v1447_v63, %v2315_v54 }
 0x518   : > { %v1974_v0 = vpop.f32.mrf.mxu0 }
 0x519   : > { %v1528_v52 = vsub.f32 %v1203_v21, %v1527_v1  ;;  %v1529_v49 = vsub.f32 %v1204_v19, %v1527_v1 }
 0x52c   : > { %v1520_v2 = vpop.f32.mrf.mxu0 }
 0x52d   : > { %v1533_v8 = vrot.slane %v1520_v2, %v2315_v54 }
 0x52e   : > { %v1979_v3 = vpop.f32.mrf.mxu0 }
 0x52f   : > { %v1534_v4 = vmul.f32 %v1533_v8, %v1528_v52  ;;  %v1535_v30 = vmul.f32 %v1533_v8, %v1529_v49 }
 0x531   : > { %v1538_v5 = vadd.f32 %v1534_v4, %v2110_v16  ;;  %v1539_v6 = vadd.f32 %v1535_v30, %v2114_v18 }
 0x533   : > { %1540 = vst.msk [vmem:[%s278_s23] sm:$0xff] %vm309_vm0, %v1538_v5  ;;  %1541 = vst.msk [vmem:[%s278_s23 + $0x8] sm:$0xff] %vm309_vm0, %v1539_v6 }
 0x534 PF: > { %s17_s24 = sadd.s32 1, %s2001_s24  }
 0x535   : > { %p14_p4 = scmp.ge.s32.totalorder %s17_s24, 4  }
 0x537   :  { %16 = sbr.rel (!%p14_p4) target bundleno = 1 (0x1), region = 82 }

</bundles_post_ra>
